<compile_context>
chip_gen: v6e
topology: v6e:2x2x1
jax: 0.10.0
libtpu: 0.0.40
codegen_flags: <defaults>
</compile_context>

<pallas_src>
import functools
import math

import jax
import jax.numpy as jnp
from jax.experimental import pallas as pl
from jax.experimental.pallas import tpu as pltpu

EPS = 1e-20
_LANE = 128
_SUBLANE = 8
_ROW_GROUP = 16                      # bf16-safe sublane granularity
_DEFAULT_BLOCK_ROWS = 8192           # (8192, 128) f32 tile = 4 MiB per input


def _semantic_loss_kernel(pred_ref, gt_ref, partial_ref, *,
                          valid_rows, block_rows, need_mask):
    """Accumulate fused |gt-pred| + KL per-lane partial sums.

    pred_ref / gt_ref : (block_rows, 128) input tiles in VMEM (any real dtype).
    partial_ref       : (8, 128) f32 output block whose index is constant
                        across the grid, so it stays VMEM-resident and acts as
                        a vector accumulator.
    valid_rows / block_rows / need_mask are static (Python) values.
    """
    i = pl.program_id(0)

    @pl.when(i == 0)
    def _():
        partial_ref[...] = jnp.zeros_like(partial_ref)

    pred = pred_ref[...].astype(jnp.float32)
    gt = gt_ref[...].astype(jnp.float32)

    if need_mask:
        # Last grid block overruns the array: rows >= valid_rows hold undefined
        # data.  Replace them with 1.0 BEFORE the logs so they contribute
        # exactly 0 (|1-1| + (1+eps)*(log(1+eps)-log(1+eps)) == 0) and never
        # feed garbage into log().
        row_ids = i * block_rows + jax.lax.broadcasted_iota(
            jnp.int32, (block_rows, _LANE), 0)
        mask = row_ids < valid_rows
        pred = jnp.where(mask, pred, 1.0)
        gt = jnp.where(mask, gt, 1.0)

    # Fused elementwise loss term:
    #   |gt - pred| + (gt + eps) * (log(gt + eps) - log(pred + eps))
    tgt = gt + EPS
    elem = jnp.abs(gt - pred) + tgt * (jnp.log(tgt) - jnp.log(pred + EPS))

    # Reduce only along the sublane-grouped leading axis (pure VPU vreg adds);
    # no per-step cross-lane (XLU) reduction.  The reshape splits the
    # sublane-major axis on an (8, 128) vreg-tile boundary, so it should lower
    # without a relayout copy.
    partial = elem.reshape(block_rows // _SUBLANE, _SUBLANE, _LANE).sum(axis=0)
    partial_ref[...] += partial


def semantic_loss(pred_vec, gt_vec, *, block_rows=_DEFAULT_BLOCK_ROWS,
                  min_pallas_elements=0):
    """Scalar loss = mean|gt-pred| + KLDiv(log(pred+eps), gt+eps) ('mean').

    min_pallas_elements: inputs smaller than this are evaluated in plain XLA
    (kernel launch / layout overhead dominates for tiny tensors).  Production
    callers may want ~1<<20; default 0 always runs the Pallas kernel.
    """
    assert pred_vec.shape == gt_vec.shape
    n = math.prod(pred_vec.shape)
    assert n > 0

    if n < min_pallas_elements:
        return semantic_loss_ref(pred_vec, gt_vec)

    flat_pred = pred_vec.reshape(-1)
    flat_gt = gt_vec.reshape(-1)

    # Lane-dense (rows, 128) layout with rows a multiple of 16 (bf16-safe).
    # Pad (if any) is < 2048 elements, value 1.0 -> contributes exactly 0.
    group_elems = _ROW_GROUP * _LANE
    rows = pl.cdiv(n, group_elems) * _ROW_GROUP
    pad = rows * _LANE - n
    if pad:
        flat_pred = jnp.pad(flat_pred, (0, pad), constant_values=1.0)
        flat_gt = jnp.pad(flat_gt, (0, pad), constant_values=1.0)
    pred2d = flat_pred.reshape(rows, _LANE)
    gt2d = flat_gt.reshape(rows, _LANE)

    # Block rows: multiple of 16, never larger than the array (so only the
    # standard "last block overruns" case can occur).
    blk = max(_ROW_GROUP, (min(block_rows, rows) // _ROW_GROUP) * _ROW_GROUP)
    n_blocks = pl.cdiv(rows, blk)
    need_mask = (rows % blk) != 0

    kernel = functools.partial(_semantic_loss_kernel, valid_rows=rows,
                               block_rows=blk, need_mask=need_mask)

    bytes_in = (pred2d.dtype.itemsize + gt2d.dtype.itemsize) * rows * _LANE
    cost = pl.CostEstimate(
        flops=10 * rows * _LANE,
        transcendentals=2 * rows * _LANE,
        bytes_accessed=bytes_in + _SUBLANE * _LANE * 4,
    )

    partials = pl.pallas_call(
        kernel,
        out_shape=jax.ShapeDtypeStruct((_SUBLANE, _LANE), jnp.float32),
        grid_spec=pltpu.PrefetchScalarGridSpec(
            num_scalar_prefetch=0,
            grid=(n_blocks,),
            in_specs=[
                pl.BlockSpec((blk, _LANE), lambda i: (i, 0)),
                pl.BlockSpec((blk, _LANE), lambda i: (i, 0)),
            ],
            out_specs=pl.BlockSpec((_SUBLANE, _LANE), lambda i: (0, 0)),
        ),
        compiler_params=pltpu.CompilerParams(
            dimension_semantics=("arbitrary",),
            vmem_limit_bytes=48 * 1024 * 1024,
            # Let XLA fuse the (tiny) pad / reshape producers straight into the
            # kernel's operand feeds instead of materializing copies.
            allow_input_fusion=[True, True],
        ),
        cost_estimate=cost,
    )(pred2d, gt2d)

    # Tiny final cross-lane reduce + single divide by the ORIGINAL element
    # count (KLDivLoss 'mean' divides by total elements).
    return jnp.sum(partials) / jnp.float32(n)


def semantic_loss_ref(pred_vec, gt_vec):
    """Pure-JAX reference mirroring the PyTorch forward."""
    pred_vec = pred_vec.astype(jnp.float32)
    gt_vec = gt_vec.astype(jnp.float32)
    margin_loss = jnp.mean(jnp.abs(gt_vec - pred_vec))
    tgt = gt_vec + EPS
    kl = tgt * (jnp.log(tgt) - jnp.log(pred_vec + EPS))
    ce_loss = jnp.mean(kl)
    return 1.0 * margin_loss + 1.0 * ce_loss


if __name__ == "__main__":
    key = jax.random.PRNGKey(0)
    k1, k2, k3, k4 = jax.random.split(key, 4)

    # Primary case: small semantic vectors (batch=16, hidden=32), f32.
    batch, hidden = 16, 32
    pred_vec = jax.nn.softmax(jax.random.normal(k1, (batch, hidden)), -1)
    gt_vec = jax.nn.softmax(jax.random.normal(k2, (batch, hidden)), -1)
    pred_vec = pred_vec.astype(jnp.float32)
    gt_vec = gt_vec.astype(jnp.float32)

    loss = jax.block_until_ready(semantic_loss(pred_vec, gt_vec))
    ref = semantic_loss_ref(pred_vec, gt_vec)
    assert jnp.allclose(loss, ref, rtol=1e-5, atol=1e-6), (loss, ref)

    # Small-n fallback path (pure XLA) agrees as well.
    loss_fb = jax.block_until_ready(
        semantic_loss(pred_vec, gt_vec, min_pallas_elements=1 << 20))
    assert jnp.allclose(loss_fb, ref, rtol=1e-5, atol=1e-6), (loss_fb, ref)

    # bf16 + multi-block + tail-mask path: unaligned size and a small
    # block_rows so the last grid block partially overruns the array.
    b2, h2 = 45, 120
    p2 = jax.nn.softmax(jax.random.normal(k3, (b2, h2)), -1).astype(jnp.bfloat16)
    g2 = jax.nn.softmax(jax.random.normal(k4, (b2, h2)), -1).astype(jnp.bfloat16)
    loss2 = jax.block_until_ready(semantic_loss(p2, g2, block_rows=32))
    ref2 = semantic_loss_ref(p2, g2)
    assert jnp.allclose(loss2, ref2, rtol=2e-3, atol=2e-4), (loss2, ref2)

    print("KERNEL_OK")
</pallas_src>

<mosaic_0001>
module attributes {stable_mosaic.version = 11 : i64} {
  func.func @_semantic_loss_kernel(%arg0: i32, %arg1: memref<16x128xf32, #tpu.memory_space<vmem>>, %arg2: memref<16x128xf32, #tpu.memory_space<vmem>>, %arg3: memref<8x128xf32, #tpu.memory_space<vmem>>) attributes {dimension_semantics = [#tpu.dimension_semantics<arbitrary>], iteration_bounds = array<i64: 1>, scalar_prefetch = 0 : i64, scratch_operands = 0 : i64, tpu.core_type = #tpu.core_type<tc>, window_params = [{transform_indices = @transform_0, window_bounds = array<i64: 16, 128>}, {transform_indices = @transform_1, window_bounds = array<i64: 16, 128>}, {pipeline_mode = #tpu.pipeline_mode<synchronous>, transform_indices = @transform_2, window_bounds = array<i64: 8, 128>}]} {
    %c0_i32 = arith.constant 0 : i32
    %0 = arith.cmpi eq, %arg0, %c0_i32 : i32
    %1 = arith.extui %0 : i1 to i32
    %c0_i32_0 = arith.constant 0 : i32
    %2 = arith.cmpi ne, %1, %c0_i32_0 : i32
    scf.if %2 {
      %cst_10 = arith.constant 0.000000e+00 : f32
      %21 = vector.broadcast %cst_10 : f32 to vector<8x128xf32>
      %c0_11 = arith.constant 0 : index
      %c0_12 = arith.constant 0 : index
      %22 = vector.load %arg3[%c0_11, %c0_12] : memref<8x128xf32, #tpu.memory_space<vmem>>, vector<8x128xf32>
      tpu.vector_store %arg3[%c0_11, %c0_12], %21 {strides = array<i32>} : memref<8x128xf32, #tpu.memory_space<vmem>>, vector<8x128xf32>,
    } else {
    }
    %c0 = arith.constant 0 : index
    %c0_1 = arith.constant 0 : index
    %3 = vector.load %arg1[%c0, %c0_1] : memref<16x128xf32, #tpu.memory_space<vmem>>, vector<16x128xf32>
    %c0_2 = arith.constant 0 : index
    %c0_3 = arith.constant 0 : index
    %4 = vector.load %arg2[%c0_2, %c0_3] : memref<16x128xf32, #tpu.memory_space<vmem>>, vector<16x128xf32>
    %cst = arith.constant 9.99999968E-21 : f32
    %5 = vector.broadcast %cst : f32 to vector<16x128xf32>
    %6 = arith.addf %4, %5 : vector<16x128xf32>
    %7 = arith.subf %4, %3 : vector<16x128xf32>
    %8 = math.absf %7 : vector<16x128xf32>
    %9 = math.log %6 : vector<16x128xf32>
    %cst_4 = arith.constant 9.99999968E-21 : f32
    %10 = vector.broadcast %cst_4 : f32 to vector<16x128xf32>
    %11 = arith.addf %3, %10 : vector<16x128xf32>
    %12 = math.log %11 : vector<16x128xf32>
    %13 = arith.subf %9, %12 : vector<16x128xf32>
    %14 = arith.mulf %6, %13 : vector<16x128xf32>
    %15 = arith.addf %8, %14 : vector<16x128xf32>
    %16 = vector.shape_cast %15 : vector<16x128xf32> to vector<2x8x128xf32>
    %cst_5 = arith.constant dense<0.000000e+00> : vector<8x128xf32>
    %17 = vector.multi_reduction <add>, %16, %cst_5 [0] : vector<2x8x128xf32> to vector<8x128xf32>
    %c0_6 = arith.constant 0 : index
    %c0_7 = arith.constant 0 : index
    %18 = vector.load %arg3[%c0_6, %c0_7] : memref<8x128xf32, #tpu.memory_space<vmem>>, vector<8x128xf32>
    %19 = arith.addf %18, %17 : vector<8x128xf32>
    %c0_8 = arith.constant 0 : index
    %c0_9 = arith.constant 0 : index
    %20 = vector.load %arg3[%c0_8, %c0_9] : memref<8x128xf32, #tpu.memory_space<vmem>>, vector<8x128xf32>
    tpu.vector_store %arg3[%c0_8, %c0_9], %19 {strides = array<i32>} : memref<8x128xf32, #tpu.memory_space<vmem>>, vector<8x128xf32>,
    return
  }
  func.func @transform_0(%arg0: i32) -> (i32, i32) {
    %c0_i32 = arith.constant 0 : i32
    %c0_i32_0 = arith.constant 0 : i32
    return %arg0, %c0_i32 : i32, i32
  }
  func.func @transform_1(%arg0: i32) -> (i32, i32) {
    %c0_i32 = arith.constant 0 : i32
    %c0_i32_0 = arith.constant 0 : i32
    return %arg0, %c0_i32 : i32, i32
  }
  func.func @transform_2(%arg0: i32) -> (i32, i32) {
    %c0_i32 = arith.constant 0 : i32
    %c0_i32_0 = arith.constant 0 : i32
    %c0_i32_1 = arith.constant 0 : i32
    return %c0_i32, %c0_i32_0 : i32, i32
  }
}

</mosaic_0001>

<bundles_post_ra>
// kernel: tpu_custom_call.1
= control target key start
LH: loop header
LB: loop body
LE: loop exit
PB: predicated region body
PF: predicated region fallthrough
CT: control target
= control target key end

     0   :  { %7 = vsyncpa [#allocation3], 0  ;;  %s200_s0 = inlined_call_operand.hbm [shape: f32[16,128], index: 0, kind: input, shape index: {}]   ;;  %s201_s1 = inlined_call_operand.hbm [shape: f32[16,128], index: 1, kind: input, shape index: {}]   ;;  %s202_s2 = inlined_call_operand.hbm [shape: f32[8,128], index: 2, kind: output, shape index: {}]  }
   0x1   :  { %8 = vsyncpa [#allocation6], 0 }
   0x2   :  { %9 = vsyncpa [#allocation4], 0  ;;  %s171_s9 = smov [#allocation2]  }
   0x3   :  { %s15_s10 = sshll.u32 %s171_s9, 4  ;;  %s16_s10 = int_to_ptr.vmem [resolvable:$true] %s15_s10 }
   0x4   :  { %s113_s11 = scalar_lea.vmem %s16_s10, 256  ;;  %p118_p1 = scmp.lt.s32.totalorder %s16_s10, %s16_s10 }
   0x5   :  { %p114_p0 = scmp.ne.s32.totalorder %s16_s10, %s113_s11  ;;  %p119_p2 = scmp.lt.s32.totalorder %s113_s11, %s113_s11 }
   0x7   :  { %p120_p3 = por %p119_p2, %p118_p1 }
   0x9   :  { %p121_p4 = pnand %p120_p3, %p114_p0 }
   0xb   :  { %124 = shalt.err (!%p121_p4)
}
   0xc   :  { %s172_s12 = smov 128   ;;  %s173_s13 = smov 8  }
   0xd   :  { %21 = dma.hbm_to_vmem [thread:$0]  %s200_s0, 256, %s16_s10, [#allocation3], %s172_s12, %s172_s12, %s173_s13  }
   0xe   :  { %s174_s16 = smov [#allocation5]  }
   0xf   :  { %s27_s17 = sshll.u32 %s174_s16, 4  ;;  %s28_s17 = int_to_ptr.vmem [resolvable:$true] %s27_s17 }
  0x10   :  { %s133_s18 = scalar_lea.vmem %s28_s17, 256  ;;  %p138_p6 = scmp.lt.s32.totalorder %s28_s17, %s28_s17 }
  0x11   :  { %p134_p5 = scmp.ne.s32.totalorder %s28_s17, %s133_s18  ;;  %p139_p7 = scmp.lt.s32.totalorder %s133_s18, %s133_s18 }
  0x13   :  { %p140_p8 = por %p139_p7, %p138_p6 }
  0x15   :  { %p141_p9 = pnand %p140_p8, %p134_p5 }
  0x17   :  { %144 = shalt.err (!%p141_p9)
}
  0x18   :  { %33 = dma.hbm_to_vmem [thread:$0]  %s201_s1, 256, %s28_s17, [#allocation6], %s172_s12, %s172_s12, %s173_s13  }
  0x19   :  { %165 = dma.done.wait [#allocation3], 256  }
  0x1a   :  { %166 = vsyncadd [#allocation3], 4294967040 }
  0x1b   :  { %167 = dma.done.wait [#allocation6], 256  }
  0x1c   :  { %168 = vsyncadd [#allocation6], 4294967040  ;;  %v45_v0 = vld [vmem:[#allocation2] sm:$0xff]  ;;  %v46_v1 = vld [vmem:[#allocation2 + $0x8] sm:$0xff]  ;;  %s175_s0 = smov [#allocation7]  }
  0x1d   :  { %v47_v2 = vld [vmem:[#allocation5] sm:$0xff]  ;;  %v48_v3 = vld [vmem:[#allocation5 + $0x8] sm:$0xff]  ;;  %v59_v5 = vadd.f32 1e-20, %v45_v0  ;;  %v60_v7 = vadd.f32 1e-20, %v46_v1 }
  0x1e   :  { %v49_v4 = vadd.f32 1e-20, %v47_v2  ;;  %v50_v6 = vadd.f32 1e-20, %v48_v3  ;;  %v51_v10 = vsub.f32 %v47_v2, %v45_v0  ;;  %v52_v13 = vsub.f32 %v48_v3, %v46_v1  ;;  %s81_s1 = sshll.u32 %s175_s0, 4  ;;  %s82_s1 = int_to_ptr.vmem [resolvable:$true] %s81_s1 }
  0x1f   :  { %s145_s21 = scalar_lea.vmem %s82_s1, 128  ;;  %p150_p11 = scmp.lt.s32.totalorder %s82_s1, %s82_s1 }
  0x20   :  { %97 = vlog2.f32 %v49_v4  ;;  %v53_v18 = vand.u32 2147483647, %v51_v10  ;;  %v54_v20 = vand.u32 2147483647, %v52_v13  ;;  %p146_p10 = scmp.ne.s32.totalorder %s82_s1, %s145_s21  ;;  %p151_p12 = scmp.lt.s32.totalorder %s145_s21, %s145_s21 }
  0x21   :  { %99 = vlog2.f32 %v50_v6 }
  0x22   :  { %101 = vlog2.f32 %v59_v5  ;;  %p152_p13 = por %p151_p12, %p150_p11 }
  0x23   :  { %103 = vlog2.f32 %v60_v7 }
  0x24   :  { %p153_p0 = pnand %p152_p13, %p146_p10 }
  0x2d   :  { %v98_v8 = vpop.eup %97 }
  0x2e   :  { %v100_v9 = vpop.eup %99  ;;  %v56_v11 = vmul.f32 0.6931472, %v98_v8 }
  0x2f   :  { %v102_v12 = vpop.eup %101  ;;  %v58_v14 = vmul.f32 0.6931472, %v100_v9 }
  0x30   :  { %v104_v15 = vpop.eup %103  ;;  %v62_v16 = vmul.f32 0.6931472, %v102_v12 }
  0x31   :  { %v64_v17 = vmul.f32 0.6931472, %v104_v15 }
  0x32   :  { %v65_v19 = vsub.f32 %v56_v11, %v62_v16 }
  0x33   :  { %v66_v21 = vsub.f32 %v58_v14, %v64_v17 }
  0x34   :  { %v67_v22 = vmul.f32 %v65_v19, %v49_v4 }
  0x35   :  { %v68_v23 = vmul.f32 %v66_v21, %v50_v6 }
  0x36   :  { %v69_v24 = vadd.f32 %v67_v22, %v53_v18 }
  0x37   :  { %v70_v25 = vadd.f32 %v68_v23, %v54_v20 }
  0x39   :  { %v71_v26 = vadd.f32 %v70_v25, %v69_v24 }
  0x3b   :  { %74 = vst [vmem:[#allocation7] sm:$0xff] %v71_v26 }
  0x3c   :  { %156 = shalt.err (!%p153_p0)
}
  0x3d   :  { %84 = dma.vmem_to_hbm [thread:$0]  %s82_s1, 128, %s202_s2, [#allocation4]  }
  0x3e   :  { %169 = dma.done.wait [#allocation4], 128  }
  0x3f   :  { %170 = vsyncadd [#allocation4], 4294967168 }
  0x40   :  { %88 = vsyncpa [#allocation3], 1 }
  0x41   :  { %89 = vsyncpa [#allocation6], 1 }
  0x42   :  { %90 = vsyncpa [#allocation4], 1 }

</bundles_post_ra>
